<compile_context>
chip_gen: v5e
topology: v5e:2x2
jax: 0.10.0
libtpu: 0.0.40
codegen_flags: <defaults>
</compile_context>

<pallas_src>
import functools

import jax
import jax.numpy as jnp
from jax.experimental import pallas as pl
from jax.experimental.pallas import tpu as pltpu

LOG_SIG_MAX = 2.0
LOG_SIG_MIN = -20.0


def _round_up(x, m):
    return (x + m - 1) // m * m


def _policy_kernel(obs_ref, w1_ref, b1_ref, w2_ref, b2_ref, wh_ref, bh_ref,
                   head_ref, *, action_dim):
    # obs tile: (TB, obs_dim) bf16. Weights bf16, biases f32, accumulate in f32.
    x = obs_ref[...]

    h1 = jnp.dot(x, w1_ref[...], preferred_element_type=jnp.float32) + b1_ref[...]
    h1 = jnp.maximum(h1, 0.0)

    h2 = jnp.dot(h1.astype(w2_ref.dtype), w2_ref[...],
                 preferred_element_type=jnp.float32) + b2_ref[...]
    h2 = jnp.maximum(h2, 0.0)

    # Fused head: columns [0, act) = mean, [act, 2*act) = log_std, rest = 0 pad.
    head = jnp.dot(h2.astype(wh_ref.dtype), wh_ref[...],
                   preferred_element_type=jnp.float32) + bh_ref[...]

    # Clamp log_std lanes. Padded lanes are exactly 0 and clip(0,-20,2)==0, so a
    # single `>= action_dim` compare is sufficient.
    col = jax.lax.broadcasted_iota(jnp.int32, head.shape, 1)
    head = jnp.where(col >= action_dim,
                     jnp.clip(head, LOG_SIG_MIN, LOG_SIG_MAX), head)

    head_ref[...] = head.astype(head_ref.dtype)


def pack_params(params):
    """One-time (per-parameter-update) packing of the weights for the kernel.

    Fuses the mean/log_std heads into one lane-dense (128, head_pad) matrix,
    casts weights/obs-path to bf16, keeps biases in f32, reshapes biases to
    (1, N) rows. Returns (packed_dict, action_dim).
    """
    w1, b1 = params["w1"], params["b1"]
    w2, b2 = params["w2"], params["b2"]
    wm, bm = params["wm"], params["bm"]
    ws, bs = params["ws"], params["bs"]
    act = wm.shape[1]

    head_pad = _round_up(2 * act, 128)
    wh = jnp.concatenate([wm, ws], axis=1)                       # (128, 2*act)
    wh = jnp.pad(wh, ((0, 0), (0, head_pad - 2 * act)))          # (128, head_pad)
    bh = jnp.pad(jnp.concatenate([bm, bs]), (0, head_pad - 2 * act)).reshape(1, -1)

    packed = {
        "w1": w1.astype(jnp.bfloat16),
        "b1": b1.reshape(1, -1).astype(jnp.float32),
        "w2": w2.astype(jnp.bfloat16),
        "b2": b2.reshape(1, -1).astype(jnp.float32),
        "wh": wh.astype(jnp.bfloat16),
        "bh": bh.astype(jnp.float32),
    }
    return packed, act


@functools.partial(jax.jit, static_argnames=("action_dim", "batch_tile"))
def gaussian_policy_forward(obs, packed, *, action_dim, batch_tile=512):
    """obs: (B, obs_dim) f32. packed: dict from pack_params(). Returns (mean, log_std) f32."""
    B, obs_dim = obs.shape
    w1b, b1r = packed["w1"], packed["b1"]
    w2b, b2r = packed["w2"], packed["b2"]
    whb, bhr = packed["wh"], packed["bh"]
    h1, h2 = w1b.shape[1], w2b.shape[1]
    head_pad = whb.shape[1]
    act = action_dim

    # --- batch tiling ---------------------------------------------------------
    # Big tiles amortize per-step pipeline overhead, but keep >= 2 grid steps
    # whenever the batch allows it so the "parallel" axis can be split across
    # v7x's two TensorCores.
    b_pad = _round_up(B, 8)
    tb = min(batch_tile, max(8, _round_up(pl.cdiv(b_pad, 2), 8)))
    b_pad = _round_up(B, tb)
    grid = (b_pad // tb,)

    obs_b = obs.astype(jnp.bfloat16)
    if b_pad != B:
        obs_b = jnp.pad(obs_b, ((0, b_pad - B), (0, 0)))

    def const(shape):
        return pl.BlockSpec(shape, lambda i: (0, 0))   # resident across grid steps

    slab = pl.pallas_call(
        functools.partial(_policy_kernel, action_dim=act),
        out_shape=jax.ShapeDtypeStruct((b_pad, head_pad), jnp.bfloat16),
        grid=grid,
        in_specs=[
            pl.BlockSpec((tb, obs_dim), lambda i: (i, 0)),   # pipelined obs tile
            const((obs_dim, h1)), const((1, h1)),
            const((h1, h2)), const((1, h2)),
            const((h2, head_pad)), const((1, head_pad)),
        ],
        out_specs=pl.BlockSpec((tb, head_pad), lambda i: (i, 0)),
        compiler_params=pltpu.CompilerParams(
            dimension_semantics=("parallel",),
        ),
    )(obs_b, w1b, b1r, w2b, b2r, whb, bhr)

    # Sliced + cast inside the same jit so these fuse with the kernel output.
    mean = slab[:B, :act].astype(jnp.float32)
    log_std = slab[:B, act:2 * act].astype(jnp.float32)
    return mean, log_std


def init_params(key, obs_dim, action_dim):
    """Deterministic init mimicking nn.Linear default U(-1/sqrt(fan_in), 1/sqrt(fan_in)).
    Weights are stored transposed, i.e. (in, out)."""
    dims = [(obs_dim, 512), (512, 128), (128, action_dim), (128, action_dim)]
    names = [("w1", "b1"), ("w2", "b2"), ("wm", "bm"), ("ws", "bs")]
    params = {}
    for (fan_in, fan_out), (wn, bn) in zip(dims, names):
        key, kw, kb = jax.random.split(key, 3)
        bound = 1.0 / jnp.sqrt(fan_in)
        params[wn] = jax.random.uniform(kw, (fan_in, fan_out), jnp.float32, -bound, bound)
        params[bn] = jax.random.uniform(kb, (fan_out,), jnp.float32, -bound, bound)
    return params


def _reference_forward(obs, p):
    # Reference with the same bf16-rounded operands so only accumulation order
    # and the final bf16 output rounding differ from the kernel.
    rb = lambda a: a.astype(jnp.bfloat16).astype(jnp.float32)
    x = rb(obs)
    h1 = jnp.maximum(x @ rb(p["w1"]) + p["b1"], 0.0)
    h2 = jnp.maximum(rb(h1) @ rb(p["w2"]) + p["b2"], 0.0)
    mean = rb(h2) @ rb(p["wm"]) + p["bm"]
    log_std = jnp.clip(rb(h2) @ rb(p["ws"]) + p["bs"], LOG_SIG_MIN, LOG_SIG_MAX)
    return mean, log_std


if __name__ == "__main__":
    key = jax.random.PRNGKey(0)
    B, obs_dim, action_dim = 8, 32, 8

    key, k_obs, k_params = jax.random.split(key, 3)
    obs = jax.random.normal(k_obs, (B, obs_dim), jnp.float32)
    params = init_params(k_params, obs_dim, action_dim)
    packed, act = pack_params(params)

    mean, log_std = gaussian_policy_forward(obs, packed, action_dim=act)
    jax.block_until_ready((mean, log_std))

    mean_ref, log_std_ref = _reference_forward(obs, params)
    assert mean.shape == (B, action_dim) and log_std.shape == (B, action_dim)
    assert jnp.allclose(mean, mean_ref, atol=1e-2, rtol=1e-2)
    assert jnp.allclose(log_std, log_std_ref, atol=1e-2, rtol=1e-2)

    # Second check: multi-step grid + batch padding (non-multiple-of-8 batch).
    B2 = 200
    key, k_obs2 = jax.random.split(key)
    obs2 = jax.random.normal(k_obs2, (B2, obs_dim), jnp.float32)
    mean2, log_std2 = gaussian_policy_forward(obs2, packed, action_dim=act)
    jax.block_until_ready((mean2, log_std2))
    mean2_ref, log_std2_ref = _reference_forward(obs2, params)
    assert mean2.shape == (B2, action_dim) and log_std2.shape == (B2, action_dim)
    assert jnp.allclose(mean2, mean2_ref, atol=1e-2, rtol=1e-2)
    assert jnp.allclose(log_std2, log_std2_ref, atol=1e-2, rtol=1e-2)

    print("KERNEL_OK")
</pallas_src>

<mosaic_0001>
module attributes {stable_mosaic.version = 11 : i64} {
  func.func @_policy_kernel(%arg0: i32, %arg1: memref<8x32xbf16, #tpu.memory_space<vmem>>, %arg2: memref<32x512xbf16, #tpu.memory_space<vmem>>, %arg3: memref<1x512xf32, #tpu.memory_space<vmem>>, %arg4: memref<512x128xbf16, #tpu.memory_space<vmem>>, %arg5: memref<1x128xf32, #tpu.memory_space<vmem>>, %arg6: memref<128x128xbf16, #tpu.memory_space<vmem>>, %arg7: memref<1x128xf32, #tpu.memory_space<vmem>>, %arg8: memref<8x128xbf16, #tpu.memory_space<vmem>>) attributes {dimension_semantics = [#tpu.dimension_semantics<parallel>], iteration_bounds = array<i64: 1>, scalar_prefetch = 0 : i64, scratch_operands = 0 : i64, tpu.core_type = #tpu.core_type<tc>, window_params = [{transform_indices = @transform_0, window_bounds = array<i64: 8, 32>}, {pipeline_mode = #tpu.pipeline_mode<synchronous>, transform_indices = @transform_1, window_bounds = array<i64: 32, 512>}, {pipeline_mode = #tpu.pipeline_mode<synchronous>, transform_indices = @transform_2, window_bounds = array<i64: 1, 512>}, {pipeline_mode = #tpu.pipeline_mode<synchronous>, transform_indices = @transform_3, window_bounds = array<i64: 512, 128>}, {pipeline_mode = #tpu.pipeline_mode<synchronous>, transform_indices = @transform_4, window_bounds = array<i64: 1, 128>}, {pipeline_mode = #tpu.pipeline_mode<synchronous>, transform_indices = @transform_5, window_bounds = array<i64: 128, 128>}, {pipeline_mode = #tpu.pipeline_mode<synchronous>, transform_indices = @transform_6, window_bounds = array<i64: 1, 128>}, {transform_indices = @transform_7, window_bounds = array<i64: 8, 128>}]} {
    %c0 = arith.constant 0 : index
    %c0_0 = arith.constant 0 : index
    %0 = vector.load %arg1[%c0, %c0_0] : memref<8x32xbf16, #tpu.memory_space<vmem>>, vector<8x32xbf16>
    %c0_1 = arith.constant 0 : index
    %c0_2 = arith.constant 0 : index
    %1 = vector.load %arg2[%c0_1, %c0_2] : memref<32x512xbf16, #tpu.memory_space<vmem>>, vector<32x512xbf16>
    %cst = arith.constant dense<0.000000e+00> : vector<8x512xf32>
    %2 = tpu.matmul %0, %1, %cst {dimension_numbers = #tpu.dot_dimension_numbers<[1], [0], [0], [1], [0, 0, 1, 1], [], []>} : vector<8x32xbf16>, vector<32x512xbf16>, vector<8x512xf32> -> vector<8x512xf32>
    %c0_3 = arith.constant 0 : index
    %c0_4 = arith.constant 0 : index
    %3 = vector.load %arg3[%c0_3, %c0_4] : memref<1x512xf32, #tpu.memory_space<vmem>>, vector<1x512xf32>
    %4 = vector.broadcast %3 : vector<1x512xf32> to vector<8x512xf32>
    %5 = arith.addf %2, %4 : vector<8x512xf32>
    %cst_5 = arith.constant 0.000000e+00 : f32
    %6 = vector.broadcast %cst_5 : f32 to vector<8x512xf32>
    %7 = arith.maximumf %5, %6 : vector<8x512xf32>
    %8 = arith.truncf %7 : vector<8x512xf32> to vector<8x512xbf16>
    %c0_6 = arith.constant 0 : index
    %c0_7 = arith.constant 0 : index
    %9 = vector.load %arg4[%c0_6, %c0_7] : memref<512x128xbf16, #tpu.memory_space<vmem>>, vector<512x128xbf16>
    %cst_8 = arith.constant dense<0.000000e+00> : vector<8x128xf32>
    %10 = tpu.matmul %8, %9, %cst_8 {dimension_numbers = #tpu.dot_dimension_numbers<[1], [0], [0], [1], [0, 0, 1, 1], [], []>} : vector<8x512xbf16>, vector<512x128xbf16>, vector<8x128xf32> -> vector<8x128xf32>
    %c0_9 = arith.constant 0 : index
    %c0_10 = arith.constant 0 : index
    %11 = vector.load %arg5[%c0_9, %c0_10] : memref<1x128xf32, #tpu.memory_space<vmem>>, vector<1x128xf32>
    %12 = vector.broadcast %11 : vector<1x128xf32> to vector<8x128xf32>
    %13 = arith.addf %10, %12 : vector<8x128xf32>
    %cst_11 = arith.constant 0.000000e+00 : f32
    %14 = vector.broadcast %cst_11 : f32 to vector<8x128xf32>
    %15 = arith.maximumf %13, %14 : vector<8x128xf32>
    %16 = arith.truncf %15 : vector<8x128xf32> to vector<8x128xbf16>
    %c0_12 = arith.constant 0 : index
    %c0_13 = arith.constant 0 : index
    %17 = vector.load %arg6[%c0_12, %c0_13] : memref<128x128xbf16, #tpu.memory_space<vmem>>, vector<128x128xbf16>
    %cst_14 = arith.constant dense<0.000000e+00> : vector<8x128xf32>
    %18 = tpu.matmul %16, %17, %cst_14 {dimension_numbers = #tpu.dot_dimension_numbers<[1], [0], [0], [1], [0, 0, 1, 1], [], []>} : vector<8x128xbf16>, vector<128x128xbf16>, vector<8x128xf32> -> vector<8x128xf32>
    %c0_15 = arith.constant 0 : index
    %c0_16 = arith.constant 0 : index
    %19 = vector.load %arg7[%c0_15, %c0_16] : memref<1x128xf32, #tpu.memory_space<vmem>>, vector<1x128xf32>
    %20 = vector.broadcast %19 : vector<1x128xf32> to vector<8x128xf32>
    %21 = arith.addf %18, %20 : vector<8x128xf32>
    %22 = tpu.iota {dimensions = array<i32: 1>} : vector<8x128xi32>
    %c8_i32 = arith.constant 8 : i32
    %23 = vector.broadcast %c8_i32 : i32 to vector<8x128xi32>
    %24 = arith.cmpi sge, %22, %23 : vector<8x128xi32>
    %cst_17 = arith.constant -2.000000e+01 : f32
    %cst_18 = arith.constant 2.000000e+00 : f32
    %25 = vector.broadcast %cst_17 : f32 to vector<8x128xf32>
    %26 = arith.maximumf %25, %21 : vector<8x128xf32>
    %27 = vector.broadcast %cst_18 : f32 to vector<8x128xf32>
    %28 = arith.minimumf %27, %26 : vector<8x128xf32>
    %29 = arith.select %24, %28, %21 : vector<8x128xi1>, vector<8x128xf32>
    %30 = arith.truncf %29 : vector<8x128xf32> to vector<8x128xbf16>
    %c0_19 = arith.constant 0 : index
    %c0_20 = arith.constant 0 : index
    %31 = vector.load %arg8[%c0_19, %c0_20] : memref<8x128xbf16, #tpu.memory_space<vmem>>, vector<8x128xbf16>
    tpu.vector_store %arg8[%c0_19, %c0_20], %30 {strides = array<i32>} : memref<8x128xbf16, #tpu.memory_space<vmem>>, vector<8x128xbf16>,
    return
  }
  func.func @transform_0(%arg0: i32) -> (i32, i32) {
    %c0_i32 = arith.constant 0 : i32
    %c0_i32_0 = arith.constant 0 : i32
    return %arg0, %c0_i32 : i32, i32
  }
  func.func @transform_1(%arg0: i32) -> (i32, i32) {
    %c0_i32 = arith.constant 0 : i32
    %c0_i32_0 = arith.constant 0 : i32
    %c0_i32_1 = arith.constant 0 : i32
    return %c0_i32, %c0_i32_0 : i32, i32
  }
  func.func @transform_2(%arg0: i32) -> (i32, i32) {
    %c0_i32 = arith.constant 0 : i32
    %c0_i32_0 = arith.constant 0 : i32
    %c0_i32_1 = arith.constant 0 : i32
    return %c0_i32, %c0_i32_0 : i32, i32
  }
  func.func @transform_3(%arg0: i32) -> (i32, i32) {
    %c0_i32 = arith.constant 0 : i32
    %c0_i32_0 = arith.constant 0 : i32
    %c0_i32_1 = arith.constant 0 : i32
    return %c0_i32, %c0_i32_0 : i32, i32
  }
  func.func @transform_4(%arg0: i32) -> (i32, i32) {
    %c0_i32 = arith.constant 0 : i32
    %c0_i32_0 = arith.constant 0 : i32
    %c0_i32_1 = arith.constant 0 : i32
    return %c0_i32, %c0_i32_0 : i32, i32
  }
  func.func @transform_5(%arg0: i32) -> (i32, i32) {
    %c0_i32 = arith.constant 0 : i32
    %c0_i32_0 = arith.constant 0 : i32
    %c0_i32_1 = arith.constant 0 : i32
    return %c0_i32, %c0_i32_0 : i32, i32
  }
  func.func @transform_6(%arg0: i32) -> (i32, i32) {
    %c0_i32 = arith.constant 0 : i32
    %c0_i32_0 = arith.constant 0 : i32
    %c0_i32_1 = arith.constant 0 : i32
    return %c0_i32, %c0_i32_0 : i32, i32
  }
  func.func @transform_7(%arg0: i32) -> (i32, i32) {
    %c0_i32 = arith.constant 0 : i32
    %c0_i32_0 = arith.constant 0 : i32
    return %arg0, %c0_i32 : i32, i32
  }
}

</mosaic_0001>

<bundles_post_ra>
// kernel: gaussian_policy_forward.1
= control target key start
LH: loop header
LB: loop body
LE: loop exit
PB: predicated region body
PF: predicated region fallthrough
CT: control target
= control target key end

     0   :  { %12 = vsyncpa [#allocation3], 0  ;;  %s1010_s0 = inlined_call_operand.vmem [shape: bf16[8,32], index: 0, kind: input, shape index: {}]   ;;  %s1011_s1 = inlined_call_operand.hbm [shape: bf16[32,512], index: 1, kind: input, shape index: {}]   ;;  %s1012_s2 = inlined_call_operand.vmem [shape: f32[1,512], index: 2, kind: input, shape index: {}]   ;;  %s1013_s3 = inlined_call_operand.hbm [shape: bf16[512,128], index: 3, kind: input, shape index: {}]   ;;  %s1014_s4 = inlined_call_operand.vmem [shape: f32[1,128], index: 4, kind: input, shape index: {}]   ;;  %s1015_s5 = inlined_call_operand.hbm [shape: bf16[128,128], index: 5, kind: input, shape index: {}]   ;;  %s1016_s6 = inlined_call_operand.vmem [shape: f32[1,128], index: 6, kind: input, shape index: {}]   ;;  %s1017_s7 = inlined_call_operand.vmem [shape: bf16[8,128], index: 7, kind: output, shape index: {}]  }
   0x1   :  { %13 = vsyncpa [#allocation5], 0  ;;  %s35_s26 = sshll.u32 %s1013_s3, 4  ;;  %s935_s27 = smov [#allocation4]   ;;  %s36_s26 = int_to_ptr.hbm [resolvable:$true] %s35_s26 }
   0x2   :  { %s37_s28 = sshll.u32 %s935_s27, 4  ;;  %s20_s8 = sshll.u32 %s1011_s1, 4  ;;  %s38_s28 = int_to_ptr.vmem [resolvable:$true] %s37_s28  ;;  %s21_s8 = int_to_ptr.hbm [resolvable:$true] %s20_s8 }
   0x3   :  { %s936_s9 = smov 64   ;;  %s937_s10 = smov 4  }
   0x4   :  { %43 = dma.hbm_to_vmem [thread:$0]  %s36_s26, 4096, %s38_s28, [#allocation5], %s936_s9, %s936_s9, %s937_s10  }
   0x5   :  { %s938_s11 = smov [#allocation2]   ;;  %s939_s13 = smov 256  }
   0x6   :  { %s22_s12 = sshll.u32 %s938_s11, 4  ;;  %s940_s14 = smov 16   ;;  %s23_s12 = int_to_ptr.vmem [resolvable:$true] %s22_s12 }
   0x7   :  { %28 = dma.hbm_to_vmem [thread:$0]  %s21_s8, 1024, %s23_s12, [#allocation3], %s939_s13, %s939_s13, %s940_s14  }
   0x8   :  { %s50_s16 = sshll.u32 %s1015_s5, 4  ;;  %s941_s17 = smov [#allocation6]   ;;  %s51_s16 = int_to_ptr.hbm [resolvable:$true] %s50_s16 }
   0x9   :  { %s52_s18 = sshll.u32 %s941_s17, 4  ;;  %s53_s18 = int_to_ptr.vmem [resolvable:$true] %s52_s18 }
   0xa   :  { %58 = dma.hbm_to_vmem [thread:$0]  %s51_s16, 1024, %s53_s18, [#allocation5], %s936_s9, %s936_s9, %s937_s10  }
   0xb   :  { %931 = dma.done.wait [#allocation3], 1024  }
   0xc   :  { %932 = vsyncadd [#allocation3], 4294966272 }
   0xd   :  { %933 = dma.done.wait [#allocation5], 5120  }
   0xe   :  { %934 = vsyncadd [#allocation5], 4294962176  ;;  %v624_v0 = vld [vmem:[#allocation2 + $0x20] sm:$0xf]  ;;  %v808_v1 = vld [vmem:[#allocation2 + $0x2c] sm:$0xf0] }
   0xf   :  { %v632_v2 = vld [vmem:[#allocation2 + $0x28] sm:$0xf]  ;;  %v625_v3 = vor.u32 %v808_v1, %v624_v0  ;;  %v809_v4 = vld [vmem:[#allocation2 + $0x34] sm:$0xf0]  ;;  %v807_v5 = vld [vmem:[#allocation2 + $0x2c] sm:$0xf] }
  0x10   :  { %v634_v6 = vld [vmem:[#allocation2 + $0x38] sm:$0xf0]  ;;  %v633_v7 = vor.u32 %v809_v4, %v632_v2  ;;  %v608_v9 = vld [vmem:[#allocation2] sm:$0xf]  ;;  %v804_v10 = vld [vmem:[#allocation2 + $0xc] sm:$0xf0] }
  0x11   :  { %v637_v8 = vor.u32 %v807_v5, %v634_v6  ;;  %v616_v11 = vld [vmem:[#allocation2 + $0x8] sm:$0xf]  ;;  %143 = vmatpush.bf16.msra.mxu1 %v625_v3  ;;  %v609_v12 = vor.u32 %v804_v10, %v608_v9  ;;  %v805_v13 = vld [vmem:[#allocation2 + $0x14] sm:$0xf0]  ;;  %v803_v14 = vld [vmem:[#allocation2 + $0xc] sm:$0xf] }
  0x12   :  { %v618_v15 = vld [vmem:[#allocation2 + $0x18] sm:$0xf0]  ;;  %169 = vmatpush.bf16.msra.mxu2 %v633_v7  ;;  %v617_v16 = vor.u32 %v805_v13, %v616_v11  ;;  %v806_v18 = vld [vmem:[#allocation2 + $0x24] sm:$0xf]  ;;  %v626_v19 = vld [vmem:[#allocation2 + $0x30] sm:$0xf0] }
  0x13   :  { %182 = vmatpush.bf16.msra.mxu3 %v637_v8  ;;  %v621_v17 = vor.u32 %v803_v14, %v618_v15  ;;  %v629_v20 = vor.u32 %v806_v18, %v626_v19  ;;  %v802_v21 = vld [vmem:[#allocation2 + $0x4] sm:$0xf]  ;;  %v817_v22 = vld [vmem:[#allocation4 + $0x38] sm:$0xff]  ;;  %v610_v23 = vld [vmem:[#allocation2 + $0x10] sm:$0xf0]  ;;  %vm133_vm0 = vcmask 261120  }
  0x14   :  { %v833_v24 = vld [vmem:[#allocation4 + $0xb8] sm:$0xff]  ;;  %v74_v26 = vld [vmem:[%s1010_s0] sm:$0xf]  ;;  %457 = vmatpush.bf16.msra.mxu0 %v817_v22  ;;  %v816_v27 = vld [vmem:[#allocation4 + $0x30] sm:$0xff]  ;;  %v613_v28 = vor.u32 %v802_v21, %v610_v23 }
  0x15   :  { %v841_v25 = vld [vmem:[#allocation4 + $0xf8] sm:$0xff]  ;;  %144 = vmatpush.bf16.msra.mxu1 %v609_v12  ;;  %v832_v29 = vld [vmem:[#allocation4 + $0xb0] sm:$0xff]  ;;  %v815_v32 = vld [vmem:[#allocation4 + $0x28] sm:$0xff] }
  0x16   :  { %170 = vmatpush.bf16.msra.mxu2 %v617_v16  ;;  %v840_v30 = vld [vmem:[#allocation4 + $0xf0] sm:$0xff]  ;;  %v825_v31 = vld [vmem:[#allocation4 + $0x78] sm:$0xff]  ;;  %v831_v33 = vld [vmem:[#allocation4 + $0xa8] sm:$0xff] }
  0x17   :  { %183 = vmatpush.bf16.msra.mxu3 %v621_v17  ;;  %v839_v34 = vld [vmem:[#allocation4 + $0xe8] sm:$0xff]  ;;  %v824_v35 = vld [vmem:[#allocation4 + $0x70] sm:$0xff]  ;;  %v814_v36 = vld [vmem:[#allocation4 + $0x20] sm:$0xff] }
  0x18   :  { %638 = vmatmul.msk.bf16.vlgmr.msra.gmra.mxu1 %vm133_vm0, %v74_v26  ;;  %458 = vmatpush.bf16.msra.mxu0 %v816_v27  ;;  %v830_v37 = vld [vmem:[#allocation4 + $0xa0] sm:$0xff]  ;;  %v813_v39 = vld [vmem:[#allocation4 + $0x18] sm:$0xff]  ;;  %v812_v42 = vld [vmem:[#allocation4 + $0x10] sm:$0xff] }
  0x19   :  { %156 = vmatpush.bf16.msrb.mxu1 %v629_v20  ;;  %640 = vmatmul.msk.bf16.vlgmr.msra.gmra.mxu2 %vm133_vm0, %v74_v26  ;;  %v838_v38 = vld [vmem:[#allocation4 + $0xe0] sm:$0xff]  ;;  %v829_v40 = vld [vmem:[#allocation4 + $0x98] sm:$0xff]  ;;  %v811_v43 = vld [vmem:[#allocation4 + $0x8] sm:$0xff] }
  0x1a   :  { %483 = vmatpush.bf16.msrb.mxu2 %v833_v24  ;;  %641 = vmatmul.msk.bf16.vlgmr.msra.gmra.mxu3 %vm133_vm0, %v74_v26  ;;  %v837_v41 = vld [vmem:[#allocation4 + $0xd8] sm:$0xff]  ;;  %v823_v44 = vld [vmem:[#allocation4 + $0x68] sm:$0xff]  ;;  %v828_v45 = vld [vmem:[#allocation4 + $0x90] sm:$0xff] }
  0x1b   :  { %496 = vmatpush.bf16.msrb.mxu3 %v841_v25  ;;  %v836_v46 = vld [vmem:[#allocation4 + $0xd0] sm:$0xff]  ;;  %v810_v47 = vld [vmem:[#allocation4] sm:$0xff]  ;;  %v827_v49 = vld [vmem:[#allocation4 + $0x88] sm:$0xff] }
  0x1c   :  { %459 = vmatpush.bf16.msra.mxu0 %v815_v32  ;;  %v822_v48 = vld [vmem:[#allocation4 + $0x60] sm:$0xff]  ;;  %v835_v50 = vld [vmem:[#allocation4 + $0xc8] sm:$0xff]  ;;  %v821_v51 = vld [vmem:[#allocation4 + $0x58] sm:$0xff] }
  0x1d   :  { %157 = vmatpush.bf16.msrb.mxu1 %v613_v28  ;;  %v826_v52 = vld [vmem:[#allocation4 + $0x80] sm:$0xff]  ;;  %v820_v54 = vld [vmem:[#allocation4 + $0x50] sm:$0xff]  ;;  %v819_v55 = vld [vmem:[#allocation4 + $0x48] sm:$0xff] }
  0x1e   :  { %484 = vmatpush.bf16.msrb.mxu2 %v832_v29  ;;  %v834_v53 = vld [vmem:[#allocation4 + $0xc0] sm:$0xff]  ;;  %v849_v57 = vld [vmem:[#allocation6 + $0x38] sm:$0xff]  ;;  %v848_v19 = vld [vmem:[#allocation6 + $0x30] sm:$0xff] }
  0x1f   :  { %497 = vmatpush.bf16.msrb.mxu3 %v840_v30  ;;  %v818_v56 = vld [vmem:[#allocation4 + $0x40] sm:$0xff]  ;;  %v847_v20 = vld [vmem:[#allocation6 + $0x28] sm:$0xff]  ;;  %v845_v22 = vld [vmem:[#allocation6 + $0x18] sm:$0xff] }
  0x20   :  { %460 = vmatpush.bf16.msra.mxu0 %v814_v36  ;;  %v83_v58 = vld [vmem:[%s1012_s2] sm:$0xf]  ;;  %v844_v23 = vld [vmem:[#allocation6 + $0x10] sm:$0xff]  ;;  %v843_v24 = vld [vmem:[#allocation6 + $0x8] sm:$0xff] }
  0x21   :  { %470 = vmatpush.bf16.msra.mxu1 %v825_v31  ;;  %v85_v59 = vperm.slane %v83_v58, 0  ;;  %v87_v63 = vperm.slane %v83_v58, 2  ;;  %v88_v0 = vperm.slane %v83_v58, 3  ;;  %v86_v11 = vperm.slane %v83_v58, 1  ;;  %v846_v21 = vld [vmem:[#allocation6 + $0x20] sm:$0xff] }
  0x22   :  { %485 = vmatpush.bf16.msrb.mxu2 %v831_v33  ;;  %v842_v25 = vld [vmem:[#allocation6] sm:$0xff] }
  0x23   :  { %498 = vmatpush.bf16.msrb.mxu3 %v839_v34  ;;  %v857_v28 = vld [vmem:[%s1014_s4] ss:$0 sm:$0xff] }
  0x24   :  { %461 = vmatpush.bf16.msra.mxu0 %v813_v39 }
  0x25   :  { %471 = vmatpush.bf16.msra.mxu1 %v824_v35 }
  0x26   :  { %486 = vmatpush.bf16.msrb.mxu2 %v830_v37 }
  0x27   :  { %499 = vmatpush.bf16.msrb.mxu3 %v838_v38 }
  0x28   :  { %639 = vmatmul.msk.bf16.vlgmr.msrb.gmra.mxu1 %vm133_vm0, %v74_v26  ;;  %462 = vmatpush.bf16.msra.mxu0 %v812_v42  ;;  %v858_v42 = vld [vmem:[%s1016_s6] ss:$0 sm:$0xff] }
  0x29   :  { %472 = vmatpush.bf16.msra.mxu1 %v823_v44 }
  0x2a   :  { %487 = vmatpush.bf16.msrb.mxu2 %v829_v40 }
  0x2b   :  { %500 = vmatpush.bf16.msrb.mxu3 %v837_v41  ;;  %v592_v41 = vlaneseq }
  0x2c   :  { %463 = vmatpush.bf16.msra.mxu0 %v811_v43 }
  0x2d   :  { %473 = vmatpush.bf16.msra.mxu1 %v822_v48  ;;  %v593_v44 = vand.u32 127, %v592_v41 }
  0x2e   :  { %488 = vmatpush.bf16.msrb.mxu2 %v828_v45 }
  0x2f   :  { %501 = vmatpush.bf16.msrb.mxu3 %v836_v46  ;;  %vm594_vm1 = vcmp.ge.s32.totalorder %v593_v44, 8 }
  0x30   :  { %464 = vmatpush.bf16.msra.mxu0 %v810_v47 }
  0x31   :  { %474 = vmatpush.bf16.msra.mxu1 %v821_v51 }
  0x32   :  { %489 = vmatpush.bf16.msrb.mxu2 %v827_v49 }
  0x33   :  { %502 = vmatpush.bf16.msrb.mxu3 %v835_v50 }
  0x34   :  { %579 = vmatpush.bf16.msrb.mxu0 %v849_v57 }
  0x35   :  { %475 = vmatpush.bf16.msra.mxu1 %v820_v54 }
  0x36   :  { %490 = vmatpush.bf16.msrb.mxu2 %v826_v52 }
  0x37   :  { %503 = vmatpush.bf16.msrb.mxu3 %v834_v53 }
  0x38   :  { %580 = vmatpush.bf16.msrb.mxu0 %v848_v19 }
  0x39   :  { %476 = vmatpush.bf16.msra.mxu1 %v819_v55 }
  0x3c   :  { %581 = vmatpush.bf16.msrb.mxu0 %v847_v20 }
  0x3d   :  { %477 = vmatpush.bf16.msra.mxu1 %v818_v56 }
  0x40   :  { %582 = vmatpush.bf16.msrb.mxu0 %v846_v21 }
  0x44   :  { %583 = vmatpush.bf16.msrb.mxu0 %v845_v22 }
  0x48   :  { %584 = vmatpush.bf16.msrb.mxu0 %v844_v23 }
  0x4c   :  { %585 = vmatpush.bf16.msrb.mxu0 %v843_v24 }
  0x50   :  { %586 = vmatpush.bf16.msrb.mxu0 %v842_v25 }
  0x95   :  { %v146_v60 = vpop.f32.mrf.mxu1 }
  0x96   :  { %v147_v61 = vadd.f32 %v146_v60, %v85_v59 }
  0x98   :  { %v189_v62 = vmax.f32 %v147_v61, 0.0 }
  0x9a   :  { %v193_v1 = vpack.c.bf16 %v189_v62, %v189_v62 }
  0x9c   :  { %v172_v2 = vpop.f32.mrf.mxu2  ;;  %465 = vmatmul.bf16.vlgmr.msra.gmra.mxu0 %v193_v1 }
  0x9d   :  { %v185_v3 = vpop.f32.mrf.mxu3  ;;  %v173_v4 = vadd.f32 %v172_v2, %v87_v63  ;;  %v148_v6 = vpop.f32.mrf.mxu1 }
  0x9e   :  { %v186_v5 = vadd.f32 %v185_v3, %v88_v0 }
  0x9f   :  { %v191_v7 = vmax.f32 %v173_v4, 0.0 }
  0xa0   :  { %v192_v8 = vmax.f32 %v186_v5, 0.0 }
  0xa1   :  { %v195_v9 = vpack.c.bf16 %v191_v7, %v191_v7 }
  0xa2   :  { %v196_v10 = vpack.c.bf16 %v192_v8, %v192_v8 }
  0xa3   :  { %491 = vmatmul.bf16.vlgmr.msrb.gmra.mxu2 %v195_v9 }
  0xa4   :  { %504 = vmatmul.bf16.vlgmr.msrb.gmra.mxu3 %v196_v10  ;;  %v174_v12 = vpop.f32.mrf.mxu2 }
  0xa5   :  { %v187_v13 = vpop.f32.mrf.mxu3  ;;  %v159_v14 = vpop.f32.mrf.mxu1 }
  0xa6   :  { %v160_v15 = vadd.f32 %v159_v14, %v86_v11 }
  0xa8   :  { %v190_v16 = vmax.f32 %v160_v15, 0.0 }
  0xaa   :  { %v194_v17 = vpack.c.bf16 %v190_v16, %v190_v16 }
  0xac   :  { %478 = vmatmul.bf16.vlgmr.msra.gmra.mxu1 %v194_v17 }
  0xad   :  { %v161_v18 = vpop.f32.mrf.mxu1 }
 0x119   :  { %v466_v26 = vpop.f32.mrf.mxu0 }
 0x11a   :  { %v467_v31 = vadd.f32 %v857_v28, %v466_v26 }
 0x121   :  { %v468_v27 = vpop.f32.mrf.mxu0 }
 0x126   :  { %v492_v29 = vpop.f32.mrf.mxu2 }
 0x127   :  { %v505_v30 = vpop.f32.mrf.mxu3 }
 0x129   :  { %v479_v32 = vpop.f32.mrf.mxu1 }
 0x12a   :  { %v480_v33 = vadd.f32 %v479_v32, %v467_v31 }
 0x12c   :  { %v493_v34 = vadd.f32 %v492_v29, %v480_v33 }
 0x12e   :  { %v506_v35 = vadd.f32 %v505_v30, %v493_v34  ;;  %v494_v36 = vpop.f32.mrf.mxu2 }
 0x12f   :  { %v507_v37 = vpop.f32.mrf.mxu3 }
 0x130   :  { %v509_v38 = vmax.f32 %v506_v35, 0.0 }
 0x131   :  { %v481_v39 = vpop.f32.mrf.mxu1 }
 0x132   :  { %v510_v40 = vpack.c.bf16 %v509_v38, %v509_v38 }
 0x134   :  { %587 = vmatmul.bf16.vlgmr.msrb.gmra.mxu0 %v510_v40 }
 0x1b1   :  { %v588_v43 = vpop.f32.mrf.mxu0 }
 0x1b2   :  { %v589_v45 = vadd.f32 %v858_v42, %v588_v43 }
 0x1b4   :  { %v595_v46 = vmax.f32 %v589_v45, -20.0 }
 0x1b6   :  { %v596_v47 = vmin.f32 %v595_v46, 2.0 }
 0x1b8   :  { %v597_v48 = vsel %vm594_vm1, %v596_v47, %v589_v45 }
 0x1b9   :  { %v598_v49 = vpack.c.bf16 %v597_v48, %v597_v48  ;;  %v590_v50 = vpop.f32.mrf.mxu0 }
 0x1bb   :  { %599 = vst [vmem:[%s1017_s7] sm:$0xf] %v598_v49 }
 0x1bc   :  { %604 = vsyncpa [#allocation3], 1 }
 0x1bd   :  { %605 = vsyncpa [#allocation5], 1 }

</bundles_post_ra>
